<compile_context>
chip_gen: v6e
topology: v6e:2x2x1
jax: 0.10.0
libtpu: 0.0.40
codegen_flags: <defaults>
</compile_context>

<pallas_src>
import functools

import jax
import jax.numpy as jnp
import numpy as np
from jax.experimental import pallas as pl
from jax.experimental.pallas import tpu as pltpu


def _tpa_fused_kernel(hflat_ref, ht_ref, wconv_ref, brow_ref, wht_ref, bcat_ref,
                      w2v_ref, tile_ref, tilet_ref, seg_ref, segt_ref, out_ref,
                      *, filter_num):
    """Fused TemporalPatternAttention forward (MXU-centric, no scratch).

    hflat_ref : (B, attn_len*attn_size)        H, channel squeezed + flattened
    ht_ref    : (B, attn_size)
    wconv_ref : (attn_len*attn_size, F*feat)   Toeplitz conv weights; column
                k = f*feat + t is already the PyTorch view-quirk flat order
    brow_ref  : (1, F*feat)                    conv bias row, bc[k // feat]
    wht_ref   : (attn_size, F+attn_size)       [linear1.T | linear2[:, :A].T]
    bcat_ref  : (1, F+attn_size)               [b1 | b2]
    w2v_ref   : (F, attn_size)                 linear2[:, A:].T
    tile_ref  : (F, F*feat)                    TILE[j, k] = [k %  F == j]
    tilet_ref : (F*feat, F)                    TILE.T
    seg_ref   : (F*feat, feat)                 SEG[k, i]  = [k // F == i]
    segt_ref  : (feat, F*feat)                 SEG.T
    out_ref   : (B, attn_size)
    """
    F = filter_num

    # Conv (+bias) with the view quirk absorbed into the weight layout:
    # rc[b, i*F + j] == relu(conv_vecs_after_view[b, i, j]).
    conv_flat = jnp.dot(hflat_ref[...], wconv_ref[...],
                        preferred_element_type=jnp.float32) + brow_ref[...]
    rc = jnp.maximum(conv_flat, 0.0)                         # (B, F*feat)

    # Merged ht matmul: [linear1(ht) | ht-half of linear2].
    r = jnp.dot(ht_ref[...], wht_ref[...],
                preferred_element_type=jnp.float32) + bcat_ref[...]
    w = r[:, :F]                                             # (B, F)
    ht_part = r[:, F:]                                       # (B, attn_size)

    # s[b, i] = sum_j rc[b, i*F+j] * w[b, j]  -> two MXU matmuls, no XLU sums.
    w_tiled = jnp.dot(w, tile_ref[...], preferred_element_type=jnp.float32)
    s = jnp.dot(rc * w_tiled, seg_ref[...], preferred_element_type=jnp.float32)

    alpha = 0.5 * (jnp.tanh(0.5 * s) + 1.0)                  # sigmoid, one EUP op

    # v[b, j] = sum_i alpha[b, i] * rc[b, i*F+j]
    alpha_tiled = jnp.dot(alpha, segt_ref[...],
                          preferred_element_type=jnp.float32)
    v = jnp.dot(alpha_tiled * rc, tilet_ref[...],
                preferred_element_type=jnp.float32)

    # linear2: ht part + v part.
    out_ref[...] = ht_part + jnp.dot(v, w2v_ref[...],
                                     preferred_element_type=jnp.float32)


def _conv_weight_flat(wc, bc, *, filter_size, filter_num, attn_len, attn_size):
    """Weight-side (one-time per parameter set) prep.

    Builds the Toeplitz matrix so that (H flattened per batch) @ Wconv yields
    the Conv2d output directly in the PyTorch view-quirk flat order
    k = f*feat + t, plus the matching bias row.
      Wconv[a*attn_size + x, f*feat + t] = wc[f, 0, a, x - t]  (0 <= x-t < S)
      brow[0, f*feat + t]                = bc[f]
    """
    feat = attn_size - filter_size + 1
    x_idx = jnp.arange(attn_size)[:, None]
    t_idx = jnp.arange(feat)[None, :]
    w4 = jnp.zeros((attn_len, attn_size, filter_num, feat), jnp.float32)
    for s in range(filter_size):
        sel = (x_idx == t_idx + s).astype(jnp.float32)       # (attn_size, feat)
        w_af = jnp.transpose(wc[:, 0, :, s])                 # (attn_len, F)
        w4 = w4 + w_af[:, None, :, None] * sel[None, :, None, :]
    wconv = w4.reshape(attn_len * attn_size, filter_num * feat)
    brow = jnp.repeat(bc, feat).reshape(1, filter_num * feat)
    return wconv, brow


def temporal_pattern_attention(H, ht, params, *, filter_size, filter_num,
                               attn_len, attn_size):
    wc, bc, w1, b1, w2, b2 = params              # PyTorch parameter layouts
    B = H.shape[0]
    feat = attn_size - filter_size + 1
    FF = filter_num * feat

    # ---- data-side prep (pure reshape, no compute) --------------------------
    hflat = H[:, 0].reshape(B, attn_len * attn_size)

    # ---- weight-side prep (one-time per parameter set) ----------------------
    wconv, brow = _conv_weight_flat(wc, bc, filter_size=filter_size,
                                    filter_num=filter_num, attn_len=attn_len,
                                    attn_size=attn_size)
    wht = jnp.concatenate([jnp.transpose(w1),
                           jnp.transpose(w2[:, :attn_size])], axis=1)
    bcat = jnp.concatenate([b1, b2]).reshape(1, filter_num + attn_size)
    w2v = jnp.transpose(w2[:, attn_size:])                    # (F, attn_size)

    # Constant 0/1 tiling/segment matrices for the quirk-flat index k = i*F + j.
    k = np.arange(FF)
    tile_np = (k[None, :] % filter_num
               == np.arange(filter_num)[:, None]).astype(np.float32)   # (F, FF)
    seg_np = (k[:, None] // filter_num
              == np.arange(feat)[None, :]).astype(np.float32)          # (FF, feat)
    tile = jnp.asarray(tile_np)
    tile_t = jnp.asarray(np.ascontiguousarray(tile_np.T))
    seg = jnp.asarray(seg_np)
    seg_t = jnp.asarray(np.ascontiguousarray(seg_np.T))

    kernel = functools.partial(_tpa_fused_kernel, filter_num=filter_num)

    def _full(shape):
        return pl.BlockSpec(shape, lambda i: (0, 0))

    return pl.pallas_call(
        kernel,
        out_shape=jax.ShapeDtypeStruct((B, attn_size), jnp.float32),
        grid=(1,),
        in_specs=[
            _full((B, attn_len * attn_size)),                 # hflat
            _full((B, attn_size)),                            # ht
            _full((attn_len * attn_size, FF)),                # wconv
            _full((1, FF)),                                   # brow
            _full((attn_size, filter_num + attn_size)),       # wht
            _full((1, filter_num + attn_size)),               # bcat
            _full((filter_num, attn_size)),                   # w2v
            _full((filter_num, FF)),                          # tile
            _full((FF, filter_num)),                          # tile.T
            _full((FF, feat)),                                # seg
            _full((feat, FF)),                                # seg.T
        ],
        out_specs=_full((B, attn_size)),
        compiler_params=pltpu.CompilerParams(
            dimension_semantics=("arbitrary",)),
    )(hflat, ht, wconv, brow, wht, bcat, w2v, tile, tile_t, seg, seg_t)


# ----------------------------------------------------------------------------
# Pure-JAX reference (mirrors the PyTorch forward, including the view quirk).
# ----------------------------------------------------------------------------
def reference(H, ht, params, *, filter_size, filter_num, attn_len, attn_size):
    wc, bc, w1, b1, w2, b2 = params
    B = H.shape[0]
    feat = attn_size - filter_size + 1
    patches = jnp.stack([H[:, 0, :, s:s + feat] for s in range(filter_size)],
                        axis=-1)                             # (B, attn_len, feat, S)
    conv = jnp.einsum('bats,fas->bft', patches, wc[:, 0, :, :]) + bc[None, :, None]
    conv_vecs = jnp.maximum(conv.reshape(B, feat, filter_num), 0.0)
    w = ht @ w1.T + b1
    s = jnp.sum(conv_vecs * w[:, None, :], axis=2)
    alpha = 1.0 / (1.0 + jnp.exp(-s))
    v = jnp.sum(alpha[:, :, None] * conv_vecs, axis=1)
    concat = jnp.concatenate([ht, v], axis=1)
    return concat @ w2.T + b2


if __name__ == "__main__":
    filter_size, filter_num, attn_len, attn_size = 3, 16, 8, 32
    B = 2

    key = jax.random.PRNGKey(0)
    ks = jax.random.split(key, 8)
    H = jax.random.normal(ks[0], (B, 1, attn_len, attn_size), jnp.float32)
    ht = jax.random.normal(ks[1], (B, attn_size), jnp.float32)

    # Deterministic synthetic parameters (PyTorch parameter shapes).
    wc = 0.1 * jax.random.normal(ks[2], (filter_num, 1, attn_len, filter_size),
                                 jnp.float32)
    bc = 0.1 * jax.random.normal(ks[3], (filter_num,), jnp.float32)
    w1 = 0.1 * jax.random.normal(ks[4], (filter_num, attn_size), jnp.float32)
    b1 = 0.1 * jax.random.normal(ks[5], (filter_num,), jnp.float32)
    w2 = 0.1 * jax.random.normal(ks[6], (attn_size, attn_size + filter_num),
                                 jnp.float32)
    b2 = 0.1 * jax.random.normal(ks[7], (attn_size,), jnp.float32)
    params = (wc, bc, w1, b1, w2, b2)

    out = temporal_pattern_attention(
        H, ht, params, filter_size=filter_size, filter_num=filter_num,
        attn_len=attn_len, attn_size=attn_size)
    out = jax.block_until_ready(out)

    ref = reference(H, ht, params, filter_size=filter_size,
                    filter_num=filter_num, attn_len=attn_len,
                    attn_size=attn_size)
    np.testing.assert_allclose(np.asarray(out), np.asarray(ref),
                               rtol=2e-3, atol=2e-3)
    print("KERNEL_OK")
</pallas_src>

<mosaic_0001>
module attributes {stable_mosaic.version = 11 : i64} {
  func.func @_tpa_fused_kernel(%arg0: i32, %arg1: memref<2x256xf32, #tpu.memory_space<vmem>>, %arg2: memref<2x32xf32, #tpu.memory_space<vmem>>, %arg3: memref<256x480xf32, #tpu.memory_space<vmem>>, %arg4: memref<1x480xf32, #tpu.memory_space<vmem>>, %arg5: memref<32x48xf32, #tpu.memory_space<vmem>>, %arg6: memref<1x48xf32, #tpu.memory_space<vmem>>, %arg7: memref<16x32xf32, #tpu.memory_space<vmem>>, %arg8: memref<16x480xf32, #tpu.memory_space<vmem>>, %arg9: memref<480x16xf32, #tpu.memory_space<vmem>>, %arg10: memref<480x30xf32, #tpu.memory_space<vmem>>, %arg11: memref<30x480xf32, #tpu.memory_space<vmem>>, %arg12: memref<2x32xf32, #tpu.memory_space<vmem>>) attributes {dimension_semantics = [#tpu.dimension_semantics<arbitrary>], iteration_bounds = array<i64: 1>, scalar_prefetch = 0 : i64, scratch_operands = 0 : i64, tpu.core_type = #tpu.core_type<tc>, window_params = [{pipeline_mode = #tpu.pipeline_mode<synchronous>, transform_indices = @transform_0, window_bounds = array<i64: 2, 256>}, {pipeline_mode = #tpu.pipeline_mode<synchronous>, transform_indices = @transform_1, window_bounds = array<i64: 2, 32>}, {pipeline_mode = #tpu.pipeline_mode<synchronous>, transform_indices = @transform_2, window_bounds = array<i64: 256, 480>}, {pipeline_mode = #tpu.pipeline_mode<synchronous>, transform_indices = @transform_3, window_bounds = array<i64: 1, 480>}, {pipeline_mode = #tpu.pipeline_mode<synchronous>, transform_indices = @transform_4, window_bounds = array<i64: 32, 48>}, {pipeline_mode = #tpu.pipeline_mode<synchronous>, transform_indices = @transform_5, window_bounds = array<i64: 1, 48>}, {pipeline_mode = #tpu.pipeline_mode<synchronous>, transform_indices = @transform_6, window_bounds = array<i64: 16, 32>}, {pipeline_mode = #tpu.pipeline_mode<synchronous>, transform_indices = @transform_7, window_bounds = array<i64: 16, 480>}, {pipeline_mode = #tpu.pipeline_mode<synchronous>, transform_indices = @transform_8, window_bounds = array<i64: 480, 16>}, {pipeline_mode = #tpu.pipeline_mode<synchronous>, transform_indices = @transform_9, window_bounds = array<i64: 480, 30>}, {pipeline_mode = #tpu.pipeline_mode<synchronous>, transform_indices = @transform_10, window_bounds = array<i64: 30, 480>}, {pipeline_mode = #tpu.pipeline_mode<synchronous>, transform_indices = @transform_11, window_bounds = array<i64: 2, 32>}]} {
    %c0 = arith.constant 0 : index
    %c0_0 = arith.constant 0 : index
    %0 = vector.load %arg1[%c0, %c0_0] : memref<2x256xf32, #tpu.memory_space<vmem>>, vector<2x256xf32>
    %c0_1 = arith.constant 0 : index
    %c0_2 = arith.constant 0 : index
    %1 = vector.load %arg3[%c0_1, %c0_2] : memref<256x480xf32, #tpu.memory_space<vmem>>, vector<256x480xf32>
    %cst = arith.constant dense<0.000000e+00> : vector<2x480xf32>
    %2 = tpu.matmul %0, %1, %cst {dimension_numbers = #tpu.dot_dimension_numbers<[1], [0], [0], [1], [0, 0, 1, 1], [], []>} : vector<2x256xf32>, vector<256x480xf32>, vector<2x480xf32> -> vector<2x480xf32>
    %c0_3 = arith.constant 0 : index
    %c0_4 = arith.constant 0 : index
    %3 = vector.load %arg4[%c0_3, %c0_4] : memref<1x480xf32, #tpu.memory_space<vmem>>, vector<1x480xf32>
    %4 = vector.broadcast %3 : vector<1x480xf32> to vector<2x480xf32>
    %5 = arith.addf %2, %4 : vector<2x480xf32>
    %cst_5 = arith.constant 0.000000e+00 : f32
    %6 = vector.broadcast %cst_5 : f32 to vector<2x480xf32>
    %7 = arith.maximumf %5, %6 : vector<2x480xf32>
    %c0_6 = arith.constant 0 : index
    %c0_7 = arith.constant 0 : index
    %8 = vector.load %arg2[%c0_6, %c0_7] : memref<2x32xf32, #tpu.memory_space<vmem>>, vector<2x32xf32>
    %c0_8 = arith.constant 0 : index
    %c0_9 = arith.constant 0 : index
    %9 = vector.load %arg5[%c0_8, %c0_9] : memref<32x48xf32, #tpu.memory_space<vmem>>, vector<32x48xf32>
    %cst_10 = arith.constant dense<0.000000e+00> : vector<2x48xf32>
    %10 = tpu.matmul %8, %9, %cst_10 {dimension_numbers = #tpu.dot_dimension_numbers<[1], [0], [0], [1], [0, 0, 1, 1], [], []>} : vector<2x32xf32>, vector<32x48xf32>, vector<2x48xf32> -> vector<2x48xf32>
    %c0_11 = arith.constant 0 : index
    %c0_12 = arith.constant 0 : index
    %11 = vector.load %arg6[%c0_11, %c0_12] : memref<1x48xf32, #tpu.memory_space<vmem>>, vector<1x48xf32>
    %12 = vector.broadcast %11 : vector<1x48xf32> to vector<2x48xf32>
    %13 = arith.addf %10, %12 : vector<2x48xf32>
    %14 = vector.extract_strided_slice %13 {offsets = [0, 0], sizes = [2, 16], strides = [1, 1]} : vector<2x48xf32> to vector<2x16xf32>
    %15 = vector.extract_strided_slice %13 {offsets = [0, 16], sizes = [2, 32], strides = [1, 1]} : vector<2x48xf32> to vector<2x32xf32>
    %c0_13 = arith.constant 0 : index
    %c0_14 = arith.constant 0 : index
    %16 = vector.load %arg8[%c0_13, %c0_14] : memref<16x480xf32, #tpu.memory_space<vmem>>, vector<16x480xf32>
    %cst_15 = arith.constant dense<0.000000e+00> : vector<2x480xf32>
    %17 = tpu.matmul %14, %16, %cst_15 {dimension_numbers = #tpu.dot_dimension_numbers<[1], [0], [0], [1], [0, 0, 1, 1], [], []>} : vector<2x16xf32>, vector<16x480xf32>, vector<2x480xf32> -> vector<2x480xf32>
    %18 = arith.mulf %7, %17 : vector<2x480xf32>
    %c0_16 = arith.constant 0 : index
    %c0_17 = arith.constant 0 : index
    %19 = vector.load %arg10[%c0_16, %c0_17] : memref<480x30xf32, #tpu.memory_space<vmem>>, vector<480x30xf32>
    %cst_18 = arith.constant dense<0.000000e+00> : vector<2x30xf32>
    %20 = tpu.matmul %18, %19, %cst_18 {dimension_numbers = #tpu.dot_dimension_numbers<[1], [0], [0], [1], [0, 0, 1, 1], [], []>} : vector<2x480xf32>, vector<480x30xf32>, vector<2x30xf32> -> vector<2x30xf32>
    %cst_19 = arith.constant 5.000000e-01 : f32
    %21 = vector.broadcast %cst_19 : f32 to vector<2x30xf32>
    %22 = arith.mulf %21, %20 : vector<2x30xf32>
    %23 = math.tanh %22 : vector<2x30xf32>
    %cst_20 = arith.constant 1.000000e+00 : f32
    %24 = vector.broadcast %cst_20 : f32 to vector<2x30xf32>
    %25 = arith.addf %23, %24 : vector<2x30xf32>
    %cst_21 = arith.constant 5.000000e-01 : f32
    %26 = vector.broadcast %cst_21 : f32 to vector<2x30xf32>
    %27 = arith.mulf %26, %25 : vector<2x30xf32>
    %c0_22 = arith.constant 0 : index
    %c0_23 = arith.constant 0 : index
    %28 = vector.load %arg11[%c0_22, %c0_23] : memref<30x480xf32, #tpu.memory_space<vmem>>, vector<30x480xf32>
    %cst_24 = arith.constant dense<0.000000e+00> : vector<2x480xf32>
    %29 = tpu.matmul %27, %28, %cst_24 {dimension_numbers = #tpu.dot_dimension_numbers<[1], [0], [0], [1], [0, 0, 1, 1], [], []>} : vector<2x30xf32>, vector<30x480xf32>, vector<2x480xf32> -> vector<2x480xf32>
    %30 = arith.mulf %29, %7 : vector<2x480xf32>
    %c0_25 = arith.constant 0 : index
    %c0_26 = arith.constant 0 : index
    %31 = vector.load %arg9[%c0_25, %c0_26] : memref<480x16xf32, #tpu.memory_space<vmem>>, vector<480x16xf32>
    %cst_27 = arith.constant dense<0.000000e+00> : vector<2x16xf32>
    %32 = tpu.matmul %30, %31, %cst_27 {dimension_numbers = #tpu.dot_dimension_numbers<[1], [0], [0], [1], [0, 0, 1, 1], [], []>} : vector<2x480xf32>, vector<480x16xf32>, vector<2x16xf32> -> vector<2x16xf32>
    %c0_28 = arith.constant 0 : index
    %c0_29 = arith.constant 0 : index
    %33 = vector.load %arg7[%c0_28, %c0_29] : memref<16x32xf32, #tpu.memory_space<vmem>>, vector<16x32xf32>
    %cst_30 = arith.constant dense<0.000000e+00> : vector<2x32xf32>
    %34 = tpu.matmul %32, %33, %cst_30 {dimension_numbers = #tpu.dot_dimension_numbers<[1], [0], [0], [1], [0, 0, 1, 1], [], []>} : vector<2x16xf32>, vector<16x32xf32>, vector<2x32xf32> -> vector<2x32xf32>
    %35 = arith.addf %15, %34 : vector<2x32xf32>
    %c0_31 = arith.constant 0 : index
    %c0_32 = arith.constant 0 : index
    %36 = vector.load %arg12[%c0_31, %c0_32] : memref<2x32xf32, #tpu.memory_space<vmem>>, vector<2x32xf32>
    tpu.vector_store %arg12[%c0_31, %c0_32], %35 {strides = array<i32>} : memref<2x32xf32, #tpu.memory_space<vmem>>, vector<2x32xf32>,
    return
  }
  func.func @transform_0(%arg0: i32) -> (i32, i32) {
    %c0_i32 = arith.constant 0 : i32
    %c0_i32_0 = arith.constant 0 : i32
    %c0_i32_1 = arith.constant 0 : i32
    return %c0_i32, %c0_i32_0 : i32, i32
  }
  func.func @transform_1(%arg0: i32) -> (i32, i32) {
    %c0_i32 = arith.constant 0 : i32
    %c0_i32_0 = arith.constant 0 : i32
    %c0_i32_1 = arith.constant 0 : i32
    return %c0_i32, %c0_i32_0 : i32, i32
  }
  func.func @transform_2(%arg0: i32) -> (i32, i32) {
    %c0_i32 = arith.constant 0 : i32
    %c0_i32_0 = arith.constant 0 : i32
    %c0_i32_1 = arith.constant 0 : i32
    return %c0_i32, %c0_i32_0 : i32, i32
  }
  func.func @transform_3(%arg0: i32) -> (i32, i32) {
    %c0_i32 = arith.constant 0 : i32
    %c0_i32_0 = arith.constant 0 : i32
    %c0_i32_1 = arith.constant 0 : i32
    return %c0_i32, %c0_i32_0 : i32, i32
  }
  func.func @transform_4(%arg0: i32) -> (i32, i32) {
    %c0_i32 = arith.constant 0 : i32
    %c0_i32_0 = arith.constant 0 : i32
    %c0_i32_1 = arith.constant 0 : i32
    return %c0_i32, %c0_i32_0 : i32, i32
  }
  func.func @transform_5(%arg0: i32) -> (i32, i32) {
    %c0_i32 = arith.constant 0 : i32
    %c0_i32_0 = arith.constant 0 : i32
    %c0_i32_1 = arith.constant 0 : i32
    return %c0_i32, %c0_i32_0 : i32, i32
  }
  func.func @transform_6(%arg0: i32) -> (i32, i32) {
    %c0_i32 = arith.constant 0 : i32
    %c0_i32_0 = arith.constant 0 : i32
    %c0_i32_1 = arith.constant 0 : i32
    return %c0_i32, %c0_i32_0 : i32, i32
  }
  func.func @transform_7(%arg0: i32) -> (i32, i32) {
    %c0_i32 = arith.constant 0 : i32
    %c0_i32_0 = arith.constant 0 : i32
    %c0_i32_1 = arith.constant 0 : i32
    return %c0_i32, %c0_i32_0 : i32, i32
  }
  func.func @transform_8(%arg0: i32) -> (i32, i32) {
    %c0_i32 = arith.constant 0 : i32
    %c0_i32_0 = arith.constant 0 : i32
    %c0_i32_1 = arith.constant 0 : i32
    return %c0_i32, %c0_i32_0 : i32, i32
  }
  func.func @transform_9(%arg0: i32) -> (i32, i32) {
    %c0_i32 = arith.constant 0 : i32
    %c0_i32_0 = arith.constant 0 : i32
    %c0_i32_1 = arith.constant 0 : i32
    return %c0_i32, %c0_i32_0 : i32, i32
  }
  func.func @transform_10(%arg0: i32) -> (i32, i32) {
    %c0_i32 = arith.constant 0 : i32
    %c0_i32_0 = arith.constant 0 : i32
    %c0_i32_1 = arith.constant 0 : i32
    return %c0_i32, %c0_i32_0 : i32, i32
  }
  func.func @transform_11(%arg0: i32) -> (i32, i32) {
    %c0_i32 = arith.constant 0 : i32
    %c0_i32_0 = arith.constant 0 : i32
    %c0_i32_1 = arith.constant 0 : i32
    return %c0_i32, %c0_i32_0 : i32, i32
  }
}

</mosaic_0001>

<bundles_post_ra>
// kernel: tpu_custom_call.1
= control target key start
LH: loop header
LB: loop body
LE: loop exit
PB: predicated region body
PF: predicated region fallthrough
CT: control target
= control target key end

     0   :  { %s2464_s0 = inlined_call_operand.vmem [shape: f32[2,256], index: 0, kind: input, shape index: {}]   ;;  %s2465_s1 = inlined_call_operand.vmem [shape: f32[2,32], index: 1, kind: input, shape index: {}]   ;;  %s2466_s2 = inlined_call_operand.vmem [shape: f32[256,480], index: 2, kind: input, shape index: {}]   ;;  %s2467_s3 = inlined_call_operand.vmem [shape: f32[1,480], index: 3, kind: input, shape index: {}]   ;;  %s2468_s4 = inlined_call_operand.vmem [shape: f32[32,48], index: 4, kind: input, shape index: {}]   ;;  %s2469_s5 = inlined_call_operand.vmem [shape: f32[1,48], index: 5, kind: input, shape index: {}]   ;;  %s2470_s6 = inlined_call_operand.vmem [shape: f32[16,32], index: 6, kind: input, shape index: {}]   ;;  %s2471_s7 = inlined_call_operand.vmem [shape: f32[16,480], index: 7, kind: input, shape index: {}]   ;;  %s2472_s8 = inlined_call_operand.vmem [shape: f32[480,16], index: 8, kind: input, shape index: {}]   ;;  %s2473_s9 = inlined_call_operand.vmem [shape: f32[480,30], index: 9, kind: input, shape index: {}]   ;;  %s2474_s10 = inlined_call_operand.vmem [shape: f32[30,480], index: 10, kind: input, shape index: {}]   ;;  %s2475_s11 = inlined_call_operand.hbm [shape: f32[2,32], index: 11, kind: output, shape index: {}]  }
   0x1   :  { %v101_v0 = vld [vmem:[%s2466_s2 + $0x1e8] sm:$0xff]  ;;  %v100_v1 = vld [vmem:[%s2466_s2 + $0x1e0] sm:$0xff]  ;;  %v103_v28 = vld [vmem:[%s2466_s2 + $0x1f8] sm:$0xff] }
   0x2   :  { %v97_v2 = vld [vmem:[%s2466_s2 + $0x1c8] sm:$0xff]  ;;  %201 = vmatprep.subr.mxu0 %v101_v0  ;;  %v96_v3 = vld [vmem:[%s2466_s2 + $0x1c0] sm:$0xff]  ;;  %v102_v29 = vld [vmem:[%s2466_s2 + $0x1f0] sm:$0xff]  ;;  %272 = vmatprep.subr.mxu1 %v103_v28 }
   0x3   :  { %202 = vmatpush1.msra.mxu0 %v100_v1  ;;  %v93_v4 = vld [vmem:[%s2466_s2 + $0x1a8] sm:$0xff]  ;;  %v92_v5 = vld [vmem:[%s2466_s2 + $0x1a0] sm:$0xff]  ;;  %v99_v31 = vld [vmem:[%s2466_s2 + $0x1d8] sm:$0xff]  ;;  %273 = vmatpush1.msra.mxu1 %v102_v29 }
   0x4   :  { %203 = vmatprep.subr.mxu0 %v97_v2  ;;  %v89_v6 = vld [vmem:[%s2466_s2 + $0x188] sm:$0xff]  ;;  %v88_v7 = vld [vmem:[%s2466_s2 + $0x180] sm:$0xff]  ;;  %v98_v33 = vld [vmem:[%s2466_s2 + $0x1d0] sm:$0xff]  ;;  %274 = vmatprep.subr.mxu1 %v99_v31 }
   0x5   :  { %204 = vmatpush1.msra.mxu0 %v96_v3  ;;  %v85_v8 = vld [vmem:[%s2466_s2 + $0x168] sm:$0xff]  ;;  %v84_v9 = vld [vmem:[%s2466_s2 + $0x160] sm:$0xff]  ;;  %v95_v35 = vld [vmem:[%s2466_s2 + $0x1b8] sm:$0xff]  ;;  %275 = vmatpush1.msra.mxu1 %v98_v33 }
   0x6   :  { %205 = vmatprep.subr.mxu0 %v93_v4  ;;  %v81_v10 = vld [vmem:[%s2466_s2 + $0x148] sm:$0xff]  ;;  %v80_v11 = vld [vmem:[%s2466_s2 + $0x140] sm:$0xff]  ;;  %v94_v37 = vld [vmem:[%s2466_s2 + $0x1b0] sm:$0xff]  ;;  %276 = vmatprep.subr.mxu1 %v95_v35 }
   0x7   :  { %206 = vmatpush1.msra.mxu0 %v92_v5  ;;  %v77_v12 = vld [vmem:[%s2466_s2 + $0x128] sm:$0xff]  ;;  %v76_v13 = vld [vmem:[%s2466_s2 + $0x120] sm:$0xff]  ;;  %v91_v39 = vld [vmem:[%s2466_s2 + $0x198] sm:$0xff]  ;;  %277 = vmatpush1.msra.mxu1 %v94_v37 }
   0x8   :  { %207 = vmatprep.subr.mxu0 %v89_v6  ;;  %v73_v14 = vld [vmem:[%s2466_s2 + $0x108] sm:$0xff]  ;;  %v72_v15 = vld [vmem:[%s2466_s2 + $0x100] sm:$0xff]  ;;  %v90_v41 = vld [vmem:[%s2466_s2 + $0x190] sm:$0xff]  ;;  %278 = vmatprep.subr.mxu1 %v91_v39 }
   0x9   :  { %208 = vmatpush1.msra.mxu0 %v88_v7  ;;  %v69_v16 = vld [vmem:[%s2466_s2 + $0xe8] sm:$0xff]  ;;  %v68_v17 = vld [vmem:[%s2466_s2 + $0xe0] sm:$0xff]  ;;  %v87_v43 = vld [vmem:[%s2466_s2 + $0x178] sm:$0xff]  ;;  %279 = vmatpush1.msra.mxu1 %v90_v41 }
   0xa   :  { %209 = vmatprep.subr.mxu0 %v85_v8  ;;  %v65_v18 = vld [vmem:[%s2466_s2 + $0xc8] sm:$0xff]  ;;  %v64_v19 = vld [vmem:[%s2466_s2 + $0xc0] sm:$0xff]  ;;  %v86_v45 = vld [vmem:[%s2466_s2 + $0x170] sm:$0xff]  ;;  %280 = vmatprep.subr.mxu1 %v87_v43 }
   0xb   :  { %210 = vmatpush1.msra.mxu0 %v84_v9  ;;  %v61_v20 = vld [vmem:[%s2466_s2 + $0xa8] sm:$0xff]  ;;  %v60_v21 = vld [vmem:[%s2466_s2 + $0xa0] sm:$0xff]  ;;  %v83_v47 = vld [vmem:[%s2466_s2 + $0x158] sm:$0xff]  ;;  %281 = vmatpush1.msra.mxu1 %v86_v45 }
   0xc   :  { %211 = vmatprep.subr.mxu0 %v81_v10  ;;  %v57_v22 = vld [vmem:[%s2466_s2 + $0x88] sm:$0xff]  ;;  %v56_v23 = vld [vmem:[%s2466_s2 + $0x80] sm:$0xff]  ;;  %v82_v49 = vld [vmem:[%s2466_s2 + $0x150] sm:$0xff]  ;;  %282 = vmatprep.subr.mxu1 %v83_v47 }
   0xd   :  { %212 = vmatpush1.msra.mxu0 %v80_v11  ;;  %v1560_v24 = vld.sshfl [vmem:[%s2464_s0] sm:$0x33 pattern:$0x76325410]  ;;  %v53_v25 = vld [vmem:[%s2466_s2 + $0x68] sm:$0xff]  ;;  %v79_v51 = vld [vmem:[%s2466_s2 + $0x138] sm:$0xff]  ;;  %283 = vmatpush1.msra.mxu1 %v82_v49 }
   0xe   :  { %213 = vmatprep.subr.mxu0 %v77_v12  ;;  %v1567_v26 = vcombine.high %v1560_v24, %v1560_v24  ;;  %v52_v27 = vld [vmem:[%s2466_s2 + $0x60] sm:$0xff]  ;;  %v49_v30 = vld [vmem:[%s2466_s2 + $0x48] sm:$0xff]  ;;  %v78_v53 = vld [vmem:[%s2466_s2 + $0x130] sm:$0xff]  ;;  %284 = vmatprep.subr.mxu1 %v79_v51 }
   0xf   :  { %214 = vmatpush1.msra.mxu0 %v76_v13  ;;  %v48_v32 = vld [vmem:[%s2466_s2 + $0x40] sm:$0xff]  ;;  %v45_v34 = vld [vmem:[%s2466_s2 + $0x28] sm:$0xff]  ;;  %v75_v55 = vld [vmem:[%s2466_s2 + $0x118] sm:$0xff]  ;;  %285 = vmatpush1.msra.mxu1 %v78_v53 }
  0x10   :  { %215 = vmatprep.subr.mxu0 %v73_v14  ;;  %265 = vmatprep.mubr.f32.mxu0 %v1567_v26  ;;  %v44_v36 = vld [vmem:[%s2466_s2 + $0x20] sm:$0xff]  ;;  %v41_v38 = vld [vmem:[%s2466_s2 + $0x8] sm:$0xff]  ;;  %v74_v57 = vld [vmem:[%s2466_s2 + $0x110] sm:$0xff] }
  0x11   :  { %216 = vmatpush1.msra.mxu0 %v72_v15  ;;  %v40_v40 = vld [vmem:[%s2466_s2] sm:$0xff]  ;;  %v165_v42 = vld [vmem:[%s2466_s2 + $0x3e8] sm:$0xff]  ;;  %v71_v59 = vld [vmem:[%s2466_s2 + $0xf8] sm:$0xff]  ;;  %286 = vmatprep.subr.mxu1 %v75_v55 }
  0x12   :  { %217 = vmatprep.subr.mxu0 %v69_v16  ;;  %v164_v44 = vld [vmem:[%s2466_s2 + $0x3e0] sm:$0xff]  ;;  %v161_v46 = vld [vmem:[%s2466_s2 + $0x3c8] sm:$0xff]  ;;  %v70_v61 = vld [vmem:[%s2466_s2 + $0xf0] sm:$0xff]  ;;  %287 = vmatpush1.msra.mxu1 %v74_v57 }
  0x13   :  { %218 = vmatpush1.msra.mxu0 %v68_v17  ;;  %v160_v48 = vld [vmem:[%s2466_s2 + $0x3c0] sm:$0xff]  ;;  %v157_v50 = vld [vmem:[%s2466_s2 + $0x3a8] sm:$0xff]  ;;  %v67_v63 = vld [vmem:[%s2466_s2 + $0xd8] sm:$0xff]  ;;  %288 = vmatprep.subr.mxu1 %v71_v59 }
  0x14   :  { %219 = vmatprep.subr.mxu0 %v65_v18  ;;  %v156_v52 = vld [vmem:[%s2466_s2 + $0x3a0] sm:$0xff]  ;;  %v153_v54 = vld [vmem:[%s2466_s2 + $0x388] sm:$0xff]  ;;  %v66_v1 = vld [vmem:[%s2466_s2 + $0xd0] sm:$0xff]  ;;  %289 = vmatpush1.msra.mxu1 %v70_v61 }
  0x15   :  { %220 = vmatpush1.msra.mxu0 %v64_v19  ;;  %v152_v56 = vld [vmem:[%s2466_s2 + $0x380] sm:$0xff]  ;;  %v149_v58 = vld [vmem:[%s2466_s2 + $0x368] sm:$0xff]  ;;  %v63_v3 = vld [vmem:[%s2466_s2 + $0xb8] sm:$0xff] }
  0x16   :  { %221 = vmatprep.subr.mxu0 %v61_v20  ;;  %v148_v60 = vld [vmem:[%s2466_s2 + $0x360] sm:$0xff]  ;;  %v145_v62 = vld [vmem:[%s2466_s2 + $0x348] sm:$0xff] }
  0x17   :  { %222 = vmatpush1.msra.mxu0 %v60_v21  ;;  %v144_v0 = vld [vmem:[%s2466_s2 + $0x340] sm:$0xff]  ;;  %v141_v2 = vld [vmem:[%s2466_s2 + $0x328] sm:$0xff] }
  0x18   :  { %223 = vmatprep.subr.mxu0 %v57_v22 }
  0x19   :  { %224 = vmatpush1.msra.mxu0 %v56_v23 }
  0x1a   :  { %225 = vmatprep.subr.mxu0 %v53_v25 }
  0x1b   :  { %226 = vmatpush1.msra.mxu0 %v52_v27 }
  0x1c   :  { %227 = vmatprep.subr.mxu0 %v49_v30 }
  0x1d   :  { %228 = vmatpush1.msra.mxu0 %v48_v32 }
  0x1e   :  { %229 = vmatprep.subr.mxu0 %v45_v34 }
  0x1f   :  { %230 = vmatpush1.msra.mxu0 %v44_v36 }
  0x20   :  { %231 = vmatprep.subr.mxu0 %v41_v38 }
  0x21   :  { %232 = vmatpush1.msra.mxu0 %v40_v40 }
  0x22   :  { %233 = vmatprep.subr.mxu0 %v165_v42 }
  0x23   :  { %234 = vmatpush2.msra.mxu0 %v164_v44 }
  0x24   :  { %235 = vmatprep.subr.mxu0 %v161_v46 }
  0x25   :  { %236 = vmatpush2.msra.mxu0 %v160_v48 }
  0x26   :  { %237 = vmatprep.subr.mxu0 %v157_v50 }
  0x27   :  { %238 = vmatpush2.msra.mxu0 %v156_v52 }
  0x28   :  { %239 = vmatprep.subr.mxu0 %v153_v54 }
  0x29   :  { %240 = vmatpush2.msra.mxu0 %v152_v56 }
  0x2a   :  { %241 = vmatprep.subr.mxu0 %v149_v58 }
  0x2b   :  { %242 = vmatpush2.msra.mxu0 %v148_v60 }
  0x2c   :  { %16 = vsyncpa [#allocation3], 0  ;;  %243 = vmatprep.subr.mxu0 %v145_v62  ;;  %v140_v4 = vld [vmem:[%s2466_s2 + $0x320] sm:$0xff]  ;;  %290 = vmatprep.subr.mxu1 %v67_v63  ;;  %v62_v5 = vld [vmem:[%s2466_s2 + $0xb0] sm:$0xff]  ;;  %v1420_v46 = vmov 0.0   ;;  %vm1421_vm0 = vmmov 0  }
  0x2d   :  { %244 = vmatpush2.msra.mxu0 %v144_v0  ;;  %v137_v6 = vld [vmem:[%s2466_s2 + $0x308] sm:$0xff]  ;;  %291 = vmatpush1.msra.mxu1 %v66_v1  ;;  %v59_v7 = vld [vmem:[%s2466_s2 + $0x98] sm:$0xff]  ;;  %v136_v8 = vld [vmem:[%s2466_s2 + $0x300] sm:$0xff]  ;;  %vm359_vm1 = vcmask 261120   ;;  %vm441_vm2 = vcmask 130048   ;;  %vm651_vm3 = vcmask 785408  }
  0x2e   :  { %245 = vmatprep.subr.mxu0 %v141_v2  ;;  %292 = vmatprep.subr.mxu1 %v63_v3  ;;  %v58_v9 = vld [vmem:[%s2466_s2 + $0x90] sm:$0xff]  ;;  %v133_v10 = vld [vmem:[%s2466_s2 + $0x2e8] sm:$0xff]  ;;  %v55_v11 = vld [vmem:[%s2466_s2 + $0x78] sm:$0xff]  ;;  %vm819_vm4 = vcmask 1045504   ;;  %vm815_vm5 = vcmask 244736   ;;  %s1422_s13 = smov 16  }
  0x2f   :  { %246 = vmatpush2.msra.mxu0 %v140_v4  ;;  %293 = vmatpush1.msra.mxu1 %v62_v5  ;;  %v132_v12 = vld [vmem:[%s2466_s2 + $0x2e0] sm:$0xff]  ;;  %v54_v13 = vld [vmem:[%s2466_s2 + $0x70] sm:$0xff]  ;;  %v129_v14 = vld [vmem:[%s2466_s2 + $0x2c8] sm:$0xff]  ;;  %vm1265_vm6 = vcmask 254976  }
  0x30   :  { %247 = vmatprep.subr.mxu0 %v137_v6  ;;  %294 = vmatprep.subr.mxu1 %v59_v7  ;;  %v51_v15 = vld [vmem:[%s2466_s2 + $0x58] sm:$0xff]  ;;  %v128_v16 = vld [vmem:[%s2466_s2 + $0x2c0] sm:$0xff]  ;;  %v50_v17 = vld [vmem:[%s2466_s2 + $0x50] sm:$0xff] }
  0x31   :  { %248 = vmatpush2.msra.mxu0 %v136_v8  ;;  %295 = vmatpush1.msra.mxu1 %v58_v9  ;;  %v125_v18 = vld [vmem:[%s2466_s2 + $0x2a8] sm:$0xff]  ;;  %v47_v19 = vld [vmem:[%s2466_s2 + $0x38] sm:$0xff]  ;;  %v124_v20 = vld [vmem:[%s2466_s2 + $0x2a0] sm:$0xff] }
  0x32   :  { %249 = vmatprep.subr.mxu0 %v133_v10  ;;  %296 = vmatprep.subr.mxu1 %v55_v11  ;;  %v46_v21 = vld [vmem:[%s2466_s2 + $0x30] sm:$0xff]  ;;  %v121_v22 = vld [vmem:[%s2466_s2 + $0x288] sm:$0xff]  ;;  %v43_v23 = vld [vmem:[%s2466_s2 + $0x18] sm:$0xff] }
  0x33   :  { %250 = vmatpush2.msra.mxu0 %v132_v12  ;;  %297 = vmatpush1.msra.mxu1 %v54_v13  ;;  %v120_v25 = vld [vmem:[%s2466_s2 + $0x280] sm:$0xff]  ;;  %v42_v27 = vld [vmem:[%s2466_s2 + $0x10] sm:$0xff]  ;;  %v117_v28 = vld [vmem:[%s2466_s2 + $0x268] sm:$0xff] }
  0x34   :  { %251 = vmatprep.subr.mxu0 %v129_v14  ;;  %298 = vmatprep.subr.mxu1 %v51_v15  ;;  %v167_v29 = vld [vmem:[%s2466_s2 + $0x3f8] sm:$0xff]  ;;  %v116_v30 = vld [vmem:[%s2466_s2 + $0x260] sm:$0xff]  ;;  %v166_v31 = vld [vmem:[%s2466_s2 + $0x3f0] sm:$0xff] }
  0x35   :  { %252 = vmatpush2.msra.mxu0 %v128_v16  ;;  %299 = vmatpush1.msra.mxu1 %v50_v17  ;;  %v113_v32 = vld [vmem:[%s2466_s2 + $0x248] sm:$0xff]  ;;  %v163_v33 = vld [vmem:[%s2466_s2 + $0x3d8] sm:$0xff]  ;;  %v112_v34 = vld [vmem:[%s2466_s2 + $0x240] sm:$0xff] }
  0x36   :  { %253 = vmatprep.subr.mxu0 %v125_v18  ;;  %300 = vmatprep.subr.mxu1 %v47_v19  ;;  %v162_v35 = vld [vmem:[%s2466_s2 + $0x3d0] sm:$0xff]  ;;  %v109_v36 = vld [vmem:[%s2466_s2 + $0x228] sm:$0xff]  ;;  %v159_v37 = vld [vmem:[%s2466_s2 + $0x3b8] sm:$0xff] }
  0x37   :  { %254 = vmatpush2.msra.mxu0 %v124_v20  ;;  %301 = vmatpush1.msra.mxu1 %v46_v21  ;;  %v108_v38 = vld [vmem:[%s2466_s2 + $0x220] sm:$0xff]  ;;  %v158_v39 = vld [vmem:[%s2466_s2 + $0x3b0] sm:$0xff]  ;;  %v105_v40 = vld [vmem:[%s2466_s2 + $0x208] sm:$0xff] }
  0x38   :  { %255 = vmatprep.subr.mxu0 %v121_v22  ;;  %302 = vmatprep.subr.mxu1 %v43_v23  ;;  %v155_v41 = vld [vmem:[%s2466_s2 + $0x398] sm:$0xff]  ;;  %v104_v42 = vld [vmem:[%s2466_s2 + $0x200] sm:$0xff]  ;;  %v154_v43 = vld [vmem:[%s2466_s2 + $0x390] sm:$0xff] }
  0x39   :  { %256 = vmatpush2.msra.mxu0 %v120_v25  ;;  %303 = vmatpush1.msra.mxu1 %v42_v27  ;;  %v351_v44 = vld [vmem:[%s2468_s4 + $0x18] sm:$0xff]  ;;  %v350_v47 = vld [vmem:[%s2468_s4 + $0x10] sm:$0xff]  ;;  %v349_v50 = vld [vmem:[%s2468_s4 + $0x8] sm:$0xff] }
  0x3a   :  { %257 = vmatprep.subr.mxu0 %v117_v28  ;;  %304 = vmatprep.subr.mxu1 %v167_v29  ;;  %v151_v45 = vld [vmem:[%s2466_s2 + $0x378] sm:$0xff]  ;;  %v150_v48 = vld [vmem:[%s2466_s2 + $0x370] sm:$0xff]  ;;  %v348_v53 = vld [vmem:[%s2468_s4] sm:$0xff]  ;;  %s1424_s4 = smov [#allocation2]  }
  0x3b   :  { %258 = vmatpush2.msra.mxu0 %v116_v30  ;;  %305 = vmatpush2.msra.mxu1 %v166_v31  ;;  %v147_v49 = vld [vmem:[%s2466_s2 + $0x358] sm:$0xff]  ;;  %v146_v51 = vld [vmem:[%s2466_s2 + $0x350] sm:$0xff]  ;;  %v347_v55 = vld [vmem:[%s2465_s1] sm:$0x3] }
  0x3c   :  { %259 = vmatprep.subr.mxu0 %v113_v32  ;;  %306 = vmatprep.subr.mxu1 %v163_v33  ;;  %v143_v52 = vld [vmem:[%s2466_s2 + $0x338] sm:$0xff]  ;;  %v142_v54 = vld [vmem:[%s2466_s2 + $0x330] sm:$0xff]  ;;  %v438_v7 = vld [vmem:[%s2471_s7 + $0x28] sm:$0xff] }
  0x3d   :  { %260 = vmatpush2.msra.mxu0 %v112_v34  ;;  %307 = vmatpush2.msra.mxu1 %v162_v35  ;;  %v139_v56 = vld [vmem:[%s2466_s2 + $0x318] sm:$0xff]  ;;  %v138_v57 = vld [vmem:[%s2466_s2 + $0x310] sm:$0xff]  ;;  %v437_v9 = vld [vmem:[%s2471_s7 + $0x20] sm:$0xff] }
  0x3e   :  { %261 = vmatprep.subr.mxu0 %v109_v36  ;;  %308 = vmatprep.subr.mxu1 %v159_v37  ;;  %v135_v58 = vld [vmem:[%s2466_s2 + $0x2f8] sm:$0xff]  ;;  %v134_v59 = vld [vmem:[%s2466_s2 + $0x2f0] sm:$0xff]  ;;  %v434_v11 = vld [vmem:[%s2471_s7 + $0x8] sm:$0xff] }
  0x3f   :  { %262 = vmatpush2.msra.mxu0 %v108_v38  ;;  %309 = vmatpush2.msra.mxu1 %v158_v39  ;;  %v131_v60 = vld [vmem:[%s2466_s2 + $0x2d8] sm:$0xff]  ;;  %v130_v61 = vld [vmem:[%s2466_s2 + $0x2d0] sm:$0xff]  ;;  %v433_v12 = vld [vmem:[%s2471_s7] sm:$0xff] }
  0x40   :  { %263 = vmatprep.subr.mxu0 %v105_v40  ;;  %310 = vmatprep.subr.mxu1 %v155_v41  ;;  %v127_v62 = vld [vmem:[%s2466_s2 + $0x2b8] sm:$0xff]  ;;  %v126_v63 = vld [vmem:[%s2466_s2 + $0x2b0] sm:$0xff]  ;;  %v636_v15 = vld [vmem:[%s2473_s9 + $0x168] sm:$0xff] }
  0x41   :  { %264 = vmatpush2.msra.mxu0 %v104_v42  ;;  %311 = vmatpush2.msra.mxu1 %v154_v43  ;;  %v122_v0 = vld [vmem:[%s2466_s2 + $0x290] sm:$0xff]  ;;  %v119_v1 = vld [vmem:[%s2466_s2 + $0x278] sm:$0xff]  ;;  %v635_v16 = vld [vmem:[%s2473_s9 + $0x160] sm:$0xff] }
  0x42   :  { %266 = vmatmul.mubr.f32.vlgmr.msra.gmra.mxu0 %v1560_v24  ;;  %1373 = vmatprep.subr.mxu0 %v1420_v46  ;;  %v118_v2 = vld [vmem:[%s2466_s2 + $0x270] sm:$0xff]  ;;  %v115_v3 = vld [vmem:[%s2466_s2 + $0x258] sm:$0xff]  ;;  %v632_v19 = vld [vmem:[%s2473_s9 + $0x148] sm:$0xff] }
  0x43   :  { %1374 = vmatpush3.msra.mxu0 %v351_v44  ;;  %1381 = vmatprep.mubr.msk.f32.mxu0 %vm1421_vm0, %v1420_v46  ;;  %v114_v4 = vld [vmem:[%s2466_s2 + $0x250] sm:$0xff]  ;;  %v111_v5 = vld [vmem:[%s2466_s2 + $0x238] sm:$0xff]  ;;  %v631_v20 = vld [vmem:[%s2473_s9 + $0x140] sm:$0xff] }
  0x44   :  { %1375 = vmatprep.subr.mxu0 %v1420_v46  ;;  %312 = vmatprep.subr.mxu1 %v151_v45  ;;  %v110_v6 = vld [vmem:[%s2466_s2 + $0x230] sm:$0xff]  ;;  %v107_v8 = vld [vmem:[%s2466_s2 + $0x218] sm:$0xff]  ;;  %v628_v23 = vld [vmem:[%s2473_s9 + $0x128] sm:$0xff] }
  0x45   :  { %1376 = vmatpush3.msra.mxu0 %v350_v47  ;;  %313 = vmatpush2.msra.mxu1 %v150_v48  ;;  %v106_v10 = vld [vmem:[%s2466_s2 + $0x210] sm:$0xff]  ;;  %v440_v13 = vld [vmem:[%s2471_s7 + $0x38] sm:$0xff]  ;;  %v627_v25 = vld [vmem:[%s2473_s9 + $0x120] sm:$0xff] }
  0x46   :  { %1377 = vmatprep.subr.mxu0 %v1420_v46  ;;  %314 = vmatprep.subr.mxu1 %v147_v49  ;;  %v638_v14 = vld [vmem:[%s2473_s9 + $0x178] sm:$0xff]  ;;  %v633_v18 = vld [vmem:[%s2473_s9 + $0x150] sm:$0xff]  ;;  %v624_v29 = vld [vmem:[%s2473_s9 + $0x108] sm:$0xff] }
  0x47   :  { %1378 = vmatpush3.msra.mxu0 %v349_v50  ;;  %315 = vmatpush2.msra.mxu1 %v146_v51  ;;  %v634_v17 = vld [vmem:[%s2473_s9 + $0x158] sm:$0xff]  ;;  %v629_v22 = vld [vmem:[%s2473_s9 + $0x130] sm:$0xff]  ;;  %v623_v30 = vld [vmem:[%s2473_s9 + $0x100] sm:$0xff] }
  0x48   :  { %1379 = vmatprep.subr.mxu0 %v1420_v46  ;;  %316 = vmatprep.subr.mxu1 %v143_v52  ;;  %v630_v21 = vld [vmem:[%s2473_s9 + $0x138] sm:$0xff]  ;;  %v625_v28 = vld [vmem:[%s2473_s9 + $0x110] sm:$0xff]  ;;  %v648_v33 = vld [vmem:[%s2473_s9 + $0x1c8] sm:$0xff] }
  0x49   :  { %1380 = vmatpush3.msra.mxu0 %v348_v53  ;;  %317 = vmatpush2.msra.mxu1 %v142_v54  ;;  %v626_v27 = vld [vmem:[%s2473_s9 + $0x118] sm:$0xff]  ;;  %v649_v32 = vld [vmem:[%s2473_s9 + $0x1d0] sm:$0xff]  ;;  %v647_v34 = vld [vmem:[%s2473_s9 + $0x1c0] sm:$0xff] }
  0x4a   :  { %1382 = vmatmul.mubr.msk.f32.vlgmr.msra.gmra.mxu0 %vm359_vm1, %v347_v55  ;;  %318 = vmatprep.subr.mxu1 %v139_v56  ;;  %v650_v31 = vld [vmem:[%s2473_s9 + $0x1d8] sm:$0xff]  ;;  %v645_v36 = vld [vmem:[%s2473_s9 + $0x1b0] sm:$0xff]  ;;  %v644_v37 = vld [vmem:[%s2473_s9 + $0x1a8] sm:$0xff] }
  0x4b   :  { %319 = vmatpush2.msra.mxu1 %v138_v57  ;;  %336 = vmatprep.mubr.f32.mxu1 %v1567_v26  ;;  %v123_v26 = vld [vmem:[%s2466_s2 + $0x298] sm:$0xff]  ;;  %v1282_v40 = vld [vmem:[%s2469_s5] ss:$0 sm:$0xff]  ;;  %v439_v43 = vld [vmem:[%s2471_s7 + $0x30] sm:$0xff]  ;;  %s1423_s2 = smov 112  }
  0x4c   :  { %320 = vmatprep.subr.mxu1 %v135_v58  ;;  %509 = vmatprep.mubr.f32.mxu0 %v1420_v46  ;;  %v646_v35 = vld [vmem:[%s2473_s9 + $0x1b8] sm:$0xff]  ;;  %v435_v47 = vld [vmem:[%s2471_s7 + $0x10] sm:$0xff]  ;;  %v620_v52 = vld [vmem:[%s2473_s9 + $0xe8] sm:$0xff] }
  0x4d   :  { %321 = vmatpush2.msra.mxu1 %v134_v59  ;;  %473 = vmatprep.subr.mxu0 %v438_v7  ;;  %v436_v45 = vld [vmem:[%s2471_s7 + $0x18] sm:$0xff]  ;;  %v621_v50 = vld [vmem:[%s2473_s9 + $0xf0] sm:$0xff]  ;;  %v604_v53 = vld [vmem:[%s2473_s9 + $0x68] sm:$0xff] }
  0x4e   :  { %322 = vmatprep.subr.mxu1 %v131_v60  ;;  %474 = vmatpush1.msra.mxu0 %v437_v9  ;;  %v622_v48 = vld [vmem:[%s2473_s9 + $0xf8] sm:$0xff]  ;;  %v605_v51 = vld [vmem:[%s2473_s9 + $0x70] sm:$0xff]  ;;  %v619_v54 = vld [vmem:[%s2473_s9 + $0xe0] sm:$0xff] }
  0x4f   :  { %323 = vmatpush2.msra.mxu1 %v130_v61  ;;  %475 = vmatprep.subr.mxu0 %v434_v11  ;;  %v606_v49 = vld [vmem:[%s2473_s9 + $0x78] sm:$0xff]  ;;  %v603_v55 = vld [vmem:[%s2473_s9 + $0x60] sm:$0xff]  ;;  %v617_v58 = vld [vmem:[%s2473_s9 + $0xd0] sm:$0xff] }
  0x50   :  { %324 = vmatprep.subr.mxu1 %v127_v62  ;;  %476 = vmatpush1.msra.mxu0 %v433_v12  ;;  %v618_v56 = vld [vmem:[%s2473_s9 + $0xd8] sm:$0xff]  ;;  %v601_v59 = vld [vmem:[%s2473_s9 + $0x50] sm:$0xff]  ;;  %v616_v60 = vld [vmem:[%s2473_s9 + $0xc8] sm:$0xff] }
  0x51   :  { %325 = vmatpush2.msra.mxu1 %v126_v63  ;;  %544 = vmatprep.subr.mxu0 %v440_v13  ;;  %v602_v57 = vld [vmem:[%s2473_s9 + $0x58] sm:$0xff]  ;;  %v600_v61 = vld [vmem:[%s2473_s9 + $0x48] sm:$0xff]  ;;  %v615_v62 = vld [vmem:[%s2473_s9 + $0xc0] sm:$0xff] }
  0x52   :  { %326 = vmatprep.subr.mxu1 %v123_v26  ;;  %v599_v63 = vld [vmem:[%s2473_s9 + $0x40] sm:$0xff]  ;;  %v614_v26 = vld [vmem:[%s2473_s9 + $0xb8] sm:$0xff]  ;;  %v609_v9 = vld [vmem:[%s2473_s9 + $0x90] sm:$0xff] }
  0x53   :  { %327 = vmatpush2.msra.mxu1 %v122_v0  ;;  %v598_v0 = vld [vmem:[%s2473_s9 + $0x38] sm:$0xff]  ;;  %v643_v11 = vld [vmem:[%s2473_s9 + $0x1a0] sm:$0xff]  ;;  %v608_v12 = vld [vmem:[%s2473_s9 + $0x88] sm:$0xff] }
  0x54   :  { %328 = vmatprep.subr.mxu1 %v119_v1  ;;  %v613_v1 = vld [vmem:[%s2473_s9 + $0xb0] sm:$0xff]  ;;  %v610_v7 = vld [vmem:[%s2473_s9 + $0x98] sm:$0xff]  ;;  %v592_v13 = vld [vmem:[%s2473_s9 + $0x8] sm:$0xff] }
  0x55   :  { %329 = vmatpush2.msra.mxu1 %v118_v2  ;;  %v597_v2 = vld [vmem:[%s2473_s9 + $0x30] sm:$0xff] }
  0x56   :  { %330 = vmatprep.subr.mxu1 %v115_v3  ;;  %v612_v3 = vld [vmem:[%s2473_s9 + $0xa8] sm:$0xff] }
  0x57   :  { %331 = vmatpush2.msra.mxu1 %v114_v4  ;;  %v596_v4 = vld [vmem:[%s2473_s9 + $0x28] sm:$0xff] }
  0x58   :  { %332 = vmatprep.subr.mxu1 %v111_v5  ;;  %v611_v5 = vld [vmem:[%s2473_s9 + $0xa0] sm:$0xff] }
  0x59   :  { %333 = vmatpush2.msra.mxu1 %v110_v6  ;;  %v595_v6 = vld [vmem:[%s2473_s9 + $0x20] sm:$0xff] }
  0x5a   :  { %334 = vmatprep.subr.mxu1 %v107_v8  ;;  %v594_v8 = vld [vmem:[%s2473_s9 + $0x18] sm:$0xff] }
  0x5b   :  { %335 = vmatpush2.msra.mxu1 %v106_v10  ;;  %v593_v10 = vld [vmem:[%s2473_s9 + $0x10] sm:$0xff] }
  0x5c   :  { %337 = vmatmul.mubr.f32.vlgmr.msra.gmra.mxu1 %v1560_v24  ;;  %725 = vmatprep.subr.mxu1 %v1420_v46  ;;  %v637_v24 = vld [vmem:[%s2473_s9 + $0x170] sm:$0xff] }
  0x5d   :  { %726 = vmatpush1.msra.mxu1 %v638_v14  ;;  %v642_v14 = vld [vmem:[%s2473_s9 + $0x198] sm:$0xff] }
  0x5e   :  { %727 = vmatprep.subr.mxu1 %v1420_v46 }
  0x5f   :  { %728 = vmatpush1.msra.mxu1 %v637_v24  ;;  %v607_v24 = vld [vmem:[%s2473_s9 + $0x80] sm:$0xff] }
  0x60   :  { %729 = vmatprep.subr.mxu1 %v1420_v46 }
  0x61   :  { %730 = vmatpush1.msra.mxu1 %v636_v15  ;;  %v591_v15 = vld [vmem:[%s2473_s9] sm:$0xff] }
  0x62   :  { %731 = vmatprep.subr.mxu1 %v1420_v46 }
  0x63   :  { %732 = vmatpush1.msra.mxu1 %v635_v16  ;;  %v641_v16 = vld [vmem:[%s2473_s9 + $0x190] sm:$0xff] }
  0x64   :  { %733 = vmatprep.subr.mxu1 %v1420_v46 }
  0x65   :  { %734 = vmatpush1.msra.mxu1 %v634_v17  ;;  %v640_v17 = vld [vmem:[%s2473_s9 + $0x188] sm:$0xff] }
  0x66   :  { %735 = vmatprep.subr.mxu1 %v1420_v46 }
  0x67   :  { %736 = vmatpush1.msra.mxu1 %v633_v18  ;;  %v639_v18 = vld [vmem:[%s2473_s9 + $0x180] sm:$0xff] }
  0x68   :  { %737 = vmatprep.subr.mxu1 %v1420_v46 }
  0x69   :  { %738 = vmatpush1.msra.mxu1 %v632_v19  ;;  %v170_v19 = vlaneseq }
  0x6a   :  { %739 = vmatprep.subr.mxu1 %v1420_v46 }
  0x6b   :  { %740 = vmatpush1.msra.mxu1 %v631_v20  ;;  %v171_v20 = vshrl.u32 %v170_v19, 7 }
  0x6c   :  { %741 = vmatprep.subr.mxu1 %v1420_v46 }
  0x6d   :  { %742 = vmatpush1.msra.mxu1 %v630_v21  ;;  %v176_v21 = vsub.s32 1, %v171_v20 }
  0x6e   :  { %743 = vmatprep.subr.mxu1 %v1420_v46 }
  0x6f   :  { %744 = vmatpush1.msra.mxu1 %v629_v22  ;;  %v168_v22 = vld [vmem:[%s2467_s3] sm:$0xf] }
  0x70   :  { %745 = vmatprep.subr.mxu1 %v1420_v46 }
  0x71   :  { %746 = vmatpush1.msra.mxu1 %v628_v23  ;;  %v172_v23 = vsub.s32 0, %v171_v20 }
  0x72   :  { %747 = vmatprep.subr.mxu1 %v1420_v46 }
  0x73   :  { %748 = vmatpush1.msra.mxu1 %v627_v25  ;;  %v180_v25 = vsub.s32 2, %v171_v20 }
  0x74   :  { %749 = vmatprep.subr.mxu1 %v1420_v46 }
  0x75   :  { %750 = vmatpush1.msra.mxu1 %v626_v27  ;;  %v177_v27 = vrot.slane %v168_v22, %v176_v21 }
  0x76   :  { %751 = vmatprep.subr.mxu1 %v1420_v46 }
  0x77   :  { %752 = vmatpush1.msra.mxu1 %v625_v28  ;;  %v184_v28 = vsub.s32 3, %v171_v20 }
  0x78   :  { %753 = vmatprep.subr.mxu1 %v1420_v46 }
  0x79   :  { %754 = vmatpush1.msra.mxu1 %v624_v29  ;;  %v173_v29 = vrot.slane %v168_v22, %v172_v23 }
  0x7a   :  { %755 = vmatprep.subr.mxu1 %v1420_v46 }
  0x7b   :  { %756 = vmatpush1.msra.mxu1 %v623_v30 }
  0x7c   :  { %765 = vmatprep.subr.mxu1 %v1420_v46 }
  0x7d   :  { %766 = vmatpush2.msra.mxu1 %v650_v31  ;;  %v181_v31 = vrot.slane %v168_v22, %v180_v25 }
  0x7e   :  { %767 = vmatprep.subr.mxu1 %v1420_v46 }
  0x7f   :  { %768 = vmatpush2.msra.mxu1 %v649_v32 }
  0x80   :  { %769 = vmatprep.subr.mxu1 %v1420_v46 }
  0x81   :  { %770 = vmatpush2.msra.mxu1 %v648_v33  ;;  %v185_v33 = vrot.slane %v168_v22, %v184_v28  ;;  %v813_v28 = vld [vmem:[%s2474_s10 + $0x70] sm:$0x3f] }
  0x82   :  { %771 = vmatprep.subr.mxu1 %v1420_v46 }
  0x83   :  { %772 = vmatpush2.msra.mxu1 %v647_v34 }
  0x84   :  { %773 = vmatprep.subr.mxu1 %v1420_v46 }
  0x85   :  { %774 = vmatpush2.msra.mxu1 %v646_v35 }
  0x86   :  { %775 = vmatprep.subr.mxu1 %v1420_v46 }
  0x87   :  { %776 = vmatpush2.msra.mxu1 %v645_v36 }
  0x88   :  { %777 = vmatprep.subr.mxu1 %v1420_v46 }
  0x89   :  { %778 = vmatpush2.msra.mxu1 %v644_v37 }
  0x8a   :  { %779 = vmatprep.subr.mxu1 %v1420_v46 }
  0x8b   :  { %780 = vmatpush2.msra.mxu1 %v643_v11  ;;  %v1010_v11 = vld [vmem:[%s2472_s8 + $0x100] sm:$0xff] }
  0x8c   :  { %781 = vmatprep.subr.mxu1 %v1420_v46 }
  0x8d   :  { %782 = vmatpush2.msra.mxu1 %v642_v14  ;;  %v1035_v14 = vld [vmem:[%s2472_s8 + $0x1c8] sm:$0xff] }
  0x8e   :  { %783 = vmatprep.subr.mxu1 %v1420_v46 }
  0x8f   :  { %784 = vmatpush2.msra.mxu1 %v641_v16 }
  0x90   :  { %785 = vmatprep.subr.mxu1 %v1420_v46 }
  0x91   :  { %786 = vmatpush2.msra.mxu1 %v640_v17 }
  0x92   :  { %787 = vmatprep.subr.mxu1 %v1420_v46 }
  0x93   :  { %788 = vmatpush2.msra.mxu1 %v639_v18 }
  0x94   :  { %1111 = vmatprep.subr.mxu1 %v1420_v46 }
 0x102   :  { %v2012_v38 = vpop.f32.mrf.mxu0 }
 0x103   :  { %v2158_v34 = vadd.f32 %v2012_v38, %v173_v29  ;;  %v810_v29 = vld [vmem:[%s2474_s10 + $0x58] sm:$0xff] }
 0x104   :  { %v2014_v39 = vpop.f32.mrf.mxu0 }
 0x105   :  { %v2155_v32 = vadd.f32 %v2014_v39, %v177_v27 }
 0x10a   :  { %v429_v41 = vpop.f32.mrf.mxu0 }
 0x10b   :  { %v2019_v42 = vadd.f32 %v1282_v40, %v429_v41  ;;  %v344_v40 = vmax.f32 %v2155_v32, 0.0  ;;  %v1182_v32 = vld [vmem:[%s2470_s6 + $0x8] sm:$0xff] }
 0x10c   :  { %v1383_v44 = vpop.f32.mrf.mxu0 }
 0x10d   :  { %1284 = vmatmul.mubr.msk.f32.vlgmr.msra.gmra.mxu0 %vm441_vm2, %v2019_v42 }
 0x10e   :  { %545 = vmatpush1.msra.mxu0 %v439_v43  ;;  %580 = vmatprep.mubr.f32.mxu0 %v1420_v46  ;;  %v343_v43 = vmax.f32 %v2158_v34, 0.0  ;;  %v1181_v34 = vld [vmem:[%s2470_s6] sm:$0xff]  ;;  %s1273_s6 = sshll.u32 %s1424_s4, 4  ;;  %s1274_s6 = int_to_ptr.vmem [resolvable:$true] %s1273_s6 }
 0x10f   :  { %546 = vmatprep.subr.mxu0 %v436_v45  ;;  %s1398_s14 = scalar_lea.vmem %s1274_s6, 32  ;;  %p1403_p1 = scmp.lt.s32.totalorder %s1274_s6, %s1274_s6 }
 0x110   :  { %547 = vmatpush1.msra.mxu0 %v435_v47  ;;  %p1399_p0 = scmp.ne.s32.totalorder %s1274_s6, %s1398_s14  ;;  %p1404_p2 = scmp.lt.s32.totalorder %s1398_s14, %s1398_s14 }
 0x111   :  { %1285 = vmatmul.mubr.msk.f32.vlgmr.msra.gmra.mxu0 %vm441_vm2, %v2019_v42  ;;  %1300 = vmatprep.subr.mxu0 %v622_v48 }
 0x112   :  { %1301 = vmatpush3.msra.mxu0 %v606_v49  ;;  %p1405_p3 = por %p1404_p2, %p1403_p1 }
 0x113   :  { %1302 = vmatprep.subr.mxu0 %v621_v50 }
 0x114   :  { %1303 = vmatpush3.msra.mxu0 %v605_v51  ;;  %p1406_p4 = pnand %p1405_p3, %p1399_p0 }
 0x115   :  { %1304 = vmatprep.subr.mxu0 %v620_v52  ;;  %v812_v52 = vld [vmem:[%s2474_s10 + $0x68] sm:$0x3f] }
 0x116   :  { %1305 = vmatpush3.msra.mxu0 %v604_v53  ;;  %v811_v53 = vld [vmem:[%s2474_s10 + $0x60] sm:$0x3f] }
 0x117   :  { %1306 = vmatprep.subr.mxu0 %v619_v54  ;;  %v808_v54 = vld [vmem:[%s2474_s10 + $0x48] sm:$0xff] }
 0x118   :  { %1307 = vmatpush3.msra.mxu0 %v603_v55  ;;  %v807_v55 = vld [vmem:[%s2474_s10 + $0x40] sm:$0xff] }
 0x119   :  { %1308 = vmatprep.subr.mxu0 %v618_v56  ;;  %v804_v56 = vld [vmem:[%s2474_s10 + $0x28] sm:$0xff] }
 0x11a   :  { %1309 = vmatpush3.msra.mxu0 %v602_v57  ;;  %v803_v57 = vld [vmem:[%s2474_s10 + $0x20] sm:$0xff] }
 0x11b   :  { %1310 = vmatprep.subr.mxu0 %v617_v58  ;;  %v800_v58 = vld [vmem:[%s2474_s10 + $0x8] sm:$0xff] }
 0x11c   :  { %1311 = vmatpush3.msra.mxu0 %v601_v59  ;;  %v338_v30 = vpop.f32.mrf.mxu1  ;;  %v799_v59 = vld [vmem:[%s2474_s10] sm:$0xff] }
 0x11d   :  { %1312 = vmatprep.subr.mxu0 %v616_v60  ;;  %v2160_v36 = vadd.f32 %v338_v30, %v181_v31  ;;  %v814_v60 = vld [vmem:[%s2474_s10 + $0x78] sm:$0x3f]  ;;  %v809_v30 = vld [vmem:[%s2474_s10 + $0x50] sm:$0xff] }
 0x11e   :  { %1313 = vmatpush3.msra.mxu0 %v600_v61  ;;  %v340_v35 = vpop.f32.mrf.mxu1  ;;  %v1025_v61 = vld [vmem:[%s2472_s8 + $0x178] sm:$0xff] }
 0x11f   :  { %1314 = vmatprep.subr.mxu0 %v615_v62  ;;  %v2163_v41 = vadd.f32 %v340_v35, %v185_v33  ;;  %v345_v39 = vmax.f32 %v2160_v36, 0.0  ;;  %v1024_v62 = vld [vmem:[%s2472_s8 + $0x170] sm:$0xff]  ;;  %v806_v31 = vld [vmem:[%s2474_s10 + $0x38] sm:$0xff] }
 0x120   :  { %1315 = vmatpush3.msra.mxu0 %v599_v63  ;;  %v1023_v63 = vld [vmem:[%s2472_s8 + $0x168] sm:$0xff]  ;;  %v805_v33 = vld [vmem:[%s2474_s10 + $0x30] sm:$0xff]  ;;  %v802_v35 = vld [vmem:[%s2474_s10 + $0x18] sm:$0xff] }
 0x121   :  { %1316 = vmatprep.subr.mxu0 %v614_v26  ;;  %v346_v48 = vmax.f32 %v2163_v41, 0.0  ;;  %v1022_v26 = vld [vmem:[%s2472_s8 + $0x160] sm:$0xff] }
 0x122   :  { %1317 = vmatpush3.msra.mxu0 %v598_v0  ;;  %v1021_v0 = vld [vmem:[%s2472_s8 + $0x158] sm:$0xff] }
 0x123   :  { %1318 = vmatprep.subr.mxu0 %v613_v1  ;;  %v1020_v1 = vld [vmem:[%s2472_s8 + $0x150] sm:$0xff] }
 0x124   :  { %1319 = vmatpush3.msra.mxu0 %v597_v2  ;;  %v1019_v2 = vld [vmem:[%s2472_s8 + $0x148] sm:$0xff] }
 0x125   :  { %1320 = vmatprep.subr.mxu0 %v612_v3  ;;  %v1018_v3 = vld [vmem:[%s2472_s8 + $0x140] sm:$0xff] }
 0x126   :  { %1321 = vmatpush3.msra.mxu0 %v596_v4  ;;  %v1017_v4 = vld [vmem:[%s2472_s8 + $0x138] sm:$0xff] }
 0x127   :  { %1322 = vmatprep.subr.mxu0 %v611_v5  ;;  %v1016_v5 = vld [vmem:[%s2472_s8 + $0x130] sm:$0xff] }
 0x128   :  { %1323 = vmatpush3.msra.mxu0 %v595_v6  ;;  %v1015_v6 = vld [vmem:[%s2472_s8 + $0x128] sm:$0xff] }
 0x129   :  { %1324 = vmatprep.subr.mxu0 %v610_v7  ;;  %v1014_v7 = vld [vmem:[%s2472_s8 + $0x120] sm:$0xff] }
 0x12a   :  { %1325 = vmatpush3.msra.mxu0 %v594_v8  ;;  %v1013_v8 = vld [vmem:[%s2472_s8 + $0x118] sm:$0xff] }
 0x12b   :  { %1326 = vmatprep.subr.mxu0 %v609_v9  ;;  %v1012_v9 = vld [vmem:[%s2472_s8 + $0x110] sm:$0xff] }
 0x12c   :  { %1327 = vmatpush3.msra.mxu0 %v593_v10  ;;  %v1011_v10 = vld [vmem:[%s2472_s8 + $0x108] sm:$0xff] }
 0x12d   :  { %1328 = vmatprep.subr.mxu0 %v608_v12  ;;  %v1037_v12 = vld [vmem:[%s2472_s8 + $0x1d8] sm:$0xff] }
 0x12e   :  { %1329 = vmatpush3.msra.mxu0 %v592_v13  ;;  %v1036_v13 = vld [vmem:[%s2472_s8 + $0x1d0] sm:$0xff] }
 0x12f   :  { %1330 = vmatprep.subr.mxu0 %v607_v24  ;;  %v1034_v24 = vld [vmem:[%s2472_s8 + $0x1c0] sm:$0xff] }
 0x130   :  { %1331 = vmatpush3.msra.mxu0 %v591_v15  ;;  %v1033_v15 = vld [vmem:[%s2472_s8 + $0x1b8] sm:$0xff] }
 0x131   :  { %1287 = vmatprep.subr.msk.mxu0 %vm819_vm4, %v812_v52  ;;  %v990_v52 = vld [vmem:[%s2472_s8 + $0x60] sm:$0xff] }
 0x1cd   :  { %v511_v37 = vpop.f32.mrf.mxu0 }
 0x1ce   :  { %v587_v38 = vmul.f32 %v511_v37, %v343_v43  ;;  %v801_v37 = vld [vmem:[%s2474_s10 + $0x10] sm:$0xff] }
 0x1cf   :  { %v513_v44 = vpop.f32.mrf.mxu0 }
 0x1d0   :  { %v588_v45 = vmul.f32 %v513_v44, %v344_v40  ;;  %v1009_v44 = vld [vmem:[%s2472_s8 + $0xf8] sm:$0xff] }
 0x1d1   :  { %v582_v47 = vpop.f32.mrf.mxu0 }
 0x1d2   :  { %719 = vmatprep.mubr.f32.mxu0 %v588_v45  ;;  %v589_v51 = vmul.f32 %v582_v47, %v345_v39  ;;  %v993_v45 = vld [vmem:[%s2472_s8 + $0x78] sm:$0xff]  ;;  %v992_v47 = vld [vmem:[%s2472_s8 + $0x70] sm:$0xff] }
 0x1d3   :  { %v584_v49 = vpop.f32.mrf.mxu0  ;;  %720 = vmatmul.mubr.f32.vlgmr.msra.gmra.mxu0 %v587_v38  ;;  %v1008_v38 = vld [vmem:[%s2472_s8 + $0xf0] sm:$0xff] }
 0x1d4   :  { %v590_v50 = vmul.f32 %v584_v49, %v346_v48  ;;  %896 = vmatprep.mubr.f32.mxu0 %v1420_v46  ;;  %1288 = vmatpush1.msk.msra.mxu0 %vm819_vm4, %v811_v53  ;;  %v1007_v49 = vld [vmem:[%s2472_s8 + $0xe8] sm:$0xff]  ;;  %v1005_v53 = vld [vmem:[%s2472_s8 + $0xd8] sm:$0xff] }
 0x1d5   :  { %858 = vmatprep.subr.mxu0 %v808_v54  ;;  %v989_v54 = vld [vmem:[%s2472_s8 + $0x58] sm:$0xff] }
 0x1d6   :  { %1286 = vmatprep.mubr.msk.f32.mxu1 %vm651_vm3, %v590_v50  ;;  %859 = vmatpush1.msra.mxu0 %v807_v55  ;;  %v991_v50 = vld [vmem:[%s2472_s8 + $0x68] sm:$0xff]  ;;  %v1004_v55 = vld [vmem:[%s2472_s8 + $0xd0] sm:$0xff] }
 0x1d7   :  { %790 = vmatmul.mubr.f32.vlgmr.msra.gmra.mxu1 %v589_v51  ;;  %860 = vmatprep.subr.mxu0 %v804_v56  ;;  %v1006_v51 = vld [vmem:[%s2472_s8 + $0xe0] sm:$0xff]  ;;  %v988_v56 = vld [vmem:[%s2472_s8 + $0x50] sm:$0xff] }
 0x1d8   :  { %861 = vmatpush1.msra.mxu0 %v803_v57  ;;  %1112 = vmatpush1.msra.mxu1 %v1025_v61  ;;  %v1003_v57 = vld [vmem:[%s2472_s8 + $0xc8] sm:$0xff]  ;;  %v1001_v61 = vld [vmem:[%s2472_s8 + $0xb8] sm:$0xff] }
 0x1d9   :  { %862 = vmatprep.subr.mxu0 %v800_v58  ;;  %1113 = vmatprep.subr.mxu1 %v1420_v46  ;;  %v987_v58 = vld [vmem:[%s2472_s8 + $0x48] sm:$0xff] }
 0x1da   :  { %863 = vmatpush1.msra.mxu0 %v799_v59  ;;  %1114 = vmatpush1.msra.mxu1 %v1024_v62  ;;  %v1002_v59 = vld [vmem:[%s2472_s8 + $0xc0] sm:$0xff]  ;;  %v985_v62 = vld [vmem:[%s2472_s8 + $0x38] sm:$0xff] }
 0x1db   :  { %1290 = vmatprep.subr.msk.mxu0 %vm819_vm4, %v814_v60  ;;  %1115 = vmatprep.subr.mxu1 %v1420_v46  ;;  %v986_v60 = vld [vmem:[%s2472_s8 + $0x40] sm:$0xff] }
 0x1dc   :  { %1116 = vmatpush1.msra.mxu1 %v1023_v63  ;;  %v1000_v63 = vld [vmem:[%s2472_s8 + $0xb0] sm:$0xff] }
 0x1dd   :  { %1117 = vmatprep.subr.mxu1 %v1420_v46 }
 0x1de   :  { %1118 = vmatpush1.msra.mxu1 %v1022_v26  ;;  %v984_v26 = vld [vmem:[%s2472_s8 + $0x30] sm:$0xff] }
 0x1df   :  { %1119 = vmatprep.subr.mxu1 %v1420_v46 }
 0x1e0   :  { %1120 = vmatpush1.msra.mxu1 %v1021_v0  ;;  %v999_v0 = vld [vmem:[%s2472_s8 + $0xa8] sm:$0xff] }
 0x1e1   :  { %1121 = vmatprep.subr.mxu1 %v1420_v46 }
 0x1e2   :  { %1122 = vmatpush1.msra.mxu1 %v1020_v1  ;;  %v983_v1 = vld [vmem:[%s2472_s8 + $0x28] sm:$0xff] }
 0x1e3   :  { %1123 = vmatprep.subr.mxu1 %v1420_v46 }
 0x1e4   :  { %1124 = vmatpush1.msra.mxu1 %v1019_v2  ;;  %v998_v2 = vld [vmem:[%s2472_s8 + $0xa0] sm:$0xff] }
 0x1e5   :  { %1125 = vmatprep.subr.mxu1 %v1420_v46 }
 0x1e6   :  { %1126 = vmatpush1.msra.mxu1 %v1018_v3  ;;  %v982_v3 = vld [vmem:[%s2472_s8 + $0x20] sm:$0xff] }
 0x1e7   :  { %1127 = vmatprep.subr.mxu1 %v1420_v46 }
 0x1e8   :  { %1128 = vmatpush1.msra.mxu1 %v1017_v4  ;;  %v997_v4 = vld [vmem:[%s2472_s8 + $0x98] sm:$0xff] }
 0x1e9   :  { %1129 = vmatprep.subr.mxu1 %v1420_v46 }
 0x1ea   :  { %1130 = vmatpush1.msra.mxu1 %v1016_v5  ;;  %v981_v5 = vld [vmem:[%s2472_s8 + $0x18] sm:$0xff] }
 0x1eb   :  { %1131 = vmatprep.subr.mxu1 %v1420_v46 }
 0x1ec   :  { %1132 = vmatpush1.msra.mxu1 %v1015_v6  ;;  %v996_v6 = vld [vmem:[%s2472_s8 + $0x90] sm:$0xff] }
 0x1ed   :  { %1133 = vmatprep.subr.mxu1 %v1420_v46 }
 0x1ee   :  { %1134 = vmatpush1.msra.mxu1 %v1014_v7  ;;  %v1032_v7 = vld [vmem:[%s2472_s8 + $0x1b0] sm:$0xff] }
 0x1ef   :  { %1135 = vmatprep.subr.mxu1 %v1420_v46 }
 0x1f0   :  { %1136 = vmatpush1.msra.mxu1 %v1013_v8  ;;  %v980_v8 = vld [vmem:[%s2472_s8 + $0x10] sm:$0xff] }
 0x1f1   :  { %1137 = vmatprep.subr.mxu1 %v1420_v46 }
 0x1f2   :  { %1138 = vmatpush1.msra.mxu1 %v1012_v9  ;;  %v995_v9 = vld [vmem:[%s2472_s8 + $0x88] sm:$0xff] }
 0x1f3   :  { %1139 = vmatprep.subr.mxu1 %v1420_v46 }
 0x1f4   :  { %1140 = vmatpush1.msra.mxu1 %v1011_v10  ;;  %v1031_v10 = vld [vmem:[%s2472_s8 + $0x1a8] sm:$0xff] }
 0x1f5   :  { %1141 = vmatprep.subr.mxu1 %v1420_v46 }
 0x1f6   :  { %1142 = vmatpush1.msra.mxu1 %v1010_v11  ;;  %v979_v11 = vld [vmem:[%s2472_s8 + $0x8] sm:$0xff] }
 0x1f7   :  { %1151 = vmatprep.subr.mxu1 %v1420_v46 }
 0x1f8   :  { %1152 = vmatpush2.msra.mxu1 %v1037_v12  ;;  %v994_v12 = vld [vmem:[%s2472_s8 + $0x80] sm:$0xff] }
 0x1f9   :  { %1153 = vmatprep.subr.mxu1 %v1420_v46 }
 0x1fa   :  { %1154 = vmatpush2.msra.mxu1 %v1036_v13  ;;  %v1030_v13 = vld [vmem:[%s2472_s8 + $0x1a0] sm:$0xff] }
 0x1fb   :  { %1155 = vmatprep.subr.mxu1 %v1420_v46 }
 0x1fc   :  { %1156 = vmatpush2.msra.mxu1 %v1035_v14  ;;  %v978_v14 = vld [vmem:[%s2472_s8] sm:$0xff] }
 0x1fd   :  { %1157 = vmatprep.subr.mxu1 %v1420_v46 }
 0x1fe   :  { %1158 = vmatpush2.msra.mxu1 %v1034_v24  ;;  %v1029_v24 = vld [vmem:[%s2472_s8 + $0x198] sm:$0xff] }
 0x1ff   :  { %1159 = vmatprep.subr.mxu1 %v1420_v46 }
 0x200   :  { %1160 = vmatpush2.msra.mxu1 %v1033_v15  ;;  %v1028_v15 = vld [vmem:[%s2472_s8 + $0x190] sm:$0xff] }
 0x201   :  { %1161 = vmatprep.subr.mxu1 %v1420_v46 }
 0x202   :  { %1162 = vmatpush2.msra.mxu1 %v1032_v7 }
 0x203   :  { %1163 = vmatprep.subr.mxu1 %v1420_v46 }
 0x204   :  { %1164 = vmatpush2.msra.mxu1 %v1031_v10 }
 0x205   :  { %1165 = vmatprep.subr.mxu1 %v1420_v46 }
 0x206   :  { %1166 = vmatpush2.msra.mxu1 %v1030_v13 }
 0x207   :  { %1167 = vmatprep.subr.mxu1 %v1420_v46 }
 0x208   :  { %1168 = vmatpush2.msra.mxu1 %v1029_v24 }
 0x209   :  { %1169 = vmatprep.subr.mxu1 %v1420_v46 }
 0x20a   :  { %1170 = vmatpush2.msra.mxu1 %v1028_v15 }
 0x20b   :  { %1171 = vmatprep.subr.mxu1 %v1420_v46 }
 0x293   :  { %v1332_v16 = vpop.f32.mrf.mxu0 }
 0x295   :  { %v1333_v17 = vpop.f32.mrf.mxu0 }
 0x296   :  { %v1334_v18 = vadd.f32 %v1333_v17, %v1332_v16  ;;  %v1027_v16 = vld [vmem:[%s2472_s8 + $0x188] sm:$0xff]  ;;  %v1026_v17 = vld [vmem:[%s2472_s8 + $0x180] sm:$0xff] }
 0x297   :  { %v791_v19 = vpop.f32.mrf.mxu1  ;;  %1172 = vmatpush2.msra.mxu1 %v1027_v16 }
 0x298   :  { %v792_v20 = vadd.f32 %v1334_v18, %v791_v19  ;;  %1173 = vmatprep.subr.mxu1 %v1420_v46 }
 0x299   :  { %v793_v21 = vpop.f32.mrf.mxu1  ;;  %1174 = vmatpush2.msra.mxu1 %v1026_v17 }
 0x29a   :  { %v795_v22 = vmul.f32 0.5, %v792_v20 }
 0x29c   :  { %1396 = vtanh.f32 %v795_v22 }
 0x2a9   :  { %v1397_v23 = vpop.eup %1396 }
 0x2aa   :  { %v797_v25 = vadd.f32 1.0, %v1397_v23 }
 0x2ac   :  { %v798_v27 = vmul.f32 0.5, %v797_v25 }
 0x2ae   :  { %1289 = vmatmul.mubr.msk.f32.vlgmr.msra.gmra.mxu0 %vm815_vm5, %v798_v27 }
 0x2af   :  { %1291 = vmatpush1.msk.msra.mxu0 %vm819_vm4, %v813_v28  ;;  %967 = vmatprep.mubr.f32.mxu0 %v1420_v46 }
 0x2b0   :  { %929 = vmatprep.subr.mxu0 %v810_v29 }
 0x2b1   :  { %930 = vmatpush1.msra.mxu0 %v809_v30 }
 0x2b2   :  { %931 = vmatprep.subr.mxu0 %v806_v31 }
 0x2b3   :  { %932 = vmatpush1.msra.mxu0 %v805_v33 }
 0x2b4   :  { %933 = vmatprep.subr.mxu0 %v802_v35 }
 0x2b5   :  { %934 = vmatpush1.msra.mxu0 %v801_v37 }
 0x2b6   :  { %1292 = vmatmul.mubr.msk.f32.vlgmr.msra.gmra.mxu0 %vm815_vm5, %v798_v27  ;;  %1335 = vmatprep.subr.mxu0 %v1009_v44 }
 0x2b7   :  { %1336 = vmatpush3.msra.mxu0 %v993_v45 }
 0x2b8   :  { %1337 = vmatprep.subr.mxu0 %v1008_v38 }
 0x2b9   :  { %1338 = vmatpush3.msra.mxu0 %v992_v47 }
 0x2ba   :  { %1339 = vmatprep.subr.mxu0 %v1007_v49 }
 0x2bb   :  { %1340 = vmatpush3.msra.mxu0 %v991_v50 }
 0x2bc   :  { %1341 = vmatprep.subr.mxu0 %v1006_v51 }
 0x2bd   :  { %1342 = vmatpush3.msra.mxu0 %v990_v52 }
 0x2be   :  { %1343 = vmatprep.subr.mxu0 %v1005_v53 }
 0x2bf   :  { %1344 = vmatpush3.msra.mxu0 %v989_v54 }
 0x2c0   :  { %1345 = vmatprep.subr.mxu0 %v1004_v55 }
 0x2c1   :  { %1346 = vmatpush3.msra.mxu0 %v988_v56 }
 0x2c2   :  { %1347 = vmatprep.subr.mxu0 %v1003_v57 }
 0x2c3   :  { %1348 = vmatpush3.msra.mxu0 %v987_v58 }
 0x2c4   :  { %1349 = vmatprep.subr.mxu0 %v1002_v59 }
 0x2c5   :  { %1350 = vmatpush3.msra.mxu0 %v986_v60 }
 0x2c6   :  { %1351 = vmatprep.subr.mxu0 %v1001_v61 }
 0x2c7   :  { %1352 = vmatpush3.msra.mxu0 %v985_v62 }
 0x2c8   :  { %1353 = vmatprep.subr.mxu0 %v1000_v63 }
 0x2c9   :  { %1354 = vmatpush3.msra.mxu0 %v984_v26 }
 0x2ca   :  { %1355 = vmatprep.subr.mxu0 %v999_v0 }
 0x2cb   :  { %1356 = vmatpush3.msra.mxu0 %v983_v1 }
 0x2cc   :  { %1357 = vmatprep.subr.mxu0 %v998_v2 }
 0x2cd   :  { %1358 = vmatpush3.msra.mxu0 %v982_v3 }
 0x2ce   :  { %1359 = vmatprep.subr.mxu0 %v997_v4 }
 0x2cf   :  { %1360 = vmatpush3.msra.mxu0 %v981_v5 }
 0x2d0   :  { %1361 = vmatprep.subr.mxu0 %v996_v6 }
 0x2d1   :  { %1362 = vmatpush3.msra.mxu0 %v980_v8 }
 0x2d2   :  { %1363 = vmatprep.subr.mxu0 %v995_v9 }
 0x2d3   :  { %1364 = vmatpush3.msra.mxu0 %v979_v11 }
 0x2d4   :  { %1365 = vmatprep.subr.mxu0 %v994_v12 }
 0x2d5   :  { %1366 = vmatpush3.msra.mxu0 %v978_v14 }
 0x2d6   :  { %1384 = vmatprep.subr.mxu0 %v1420_v46 }
 0x36e   :  { %v898_v18 = vpop.f32.mrf.mxu0 }
 0x36f   :  { %v974_v21 = vmul.f32 %v898_v18, %v343_v43 }
 0x370   :  { %v900_v19 = vpop.f32.mrf.mxu0 }
 0x371   :  { %v975_v20 = vmul.f32 %v900_v19, %v344_v40 }
 0x373   :  { %1105 = vmatprep.mubr.f32.mxu0 %v975_v20 }
 0x374   :  { %1106 = vmatmul.mubr.f32.vlgmr.msra.gmra.mxu0 %v974_v21 }
 0x375   :  { %1388 = vmatprep.mubr.msk.f32.mxu0 %vm1421_vm0, %v1420_v46  ;;  %1385 = vmatpush3.msra.mxu0 %v1182_v32 }
 0x376   :  { %v969_v22 = vpop.f32.mrf.mxu0  ;;  %1386 = vmatprep.subr.mxu0 %v1420_v46 }
 0x377   :  { %v976_v27 = vmul.f32 %v969_v22, %v345_v39  ;;  %1387 = vmatpush3.msra.mxu0 %v1181_v34 }
 0x378   :  { %v971_v23 = vpop.f32.mrf.mxu0 }
 0x379   :  { %v977_v25 = vmul.f32 %v971_v23, %v346_v48 }
 0x37b   :  { %1293 = vmatprep.mubr.msk.f32.mxu1 %vm651_vm3, %v977_v25 }
 0x37c   :  { %1176 = vmatmul.mubr.f32.vlgmr.msra.gmra.mxu1 %v976_v27 }
 0x434   :  { %v1367_v40 = vpop.f32.mrf.mxu0 }
 0x436   :  { %v1368_v41 = vpop.f32.mrf.mxu0 }
 0x437   :  { %v1369_v43 = vadd.f32 %v1368_v41, %v1367_v40 }
 0x43c   :  { %v1177_v36 = vpop.f32.mrf.mxu1 }
 0x43d   :  { %v1178_v39 = vadd.f32 %v1369_v43, %v1177_v36 }
 0x43e   :  { %v1179_v48 = vpop.f32.mrf.mxu1 }
 0x43f   :  { %1389 = vmatmul.mubr.msk.f32.vlgmr.msra.gmra.mxu0 %vm441_vm2, %v1178_v39 }
 0x4ff   :  { %v1252_v28 = vpop.f32.mrf.mxu0 }
 0x500   :  { %1257 = vrot.lane.b32.xlu0 %v1252_v28, %s1422_s13 }
 0x501   :  { %v1390_v29 = vpop.f32.mrf.mxu0 }
 0x572   :  { %v1258_v30 = vpop.permute.xlu0 %1257 }
 0x573   :  { %v1260_v46 = vadd.f32 %v1258_v30, %v2019_v42 }
 0x575   :  { %1262 = vrot.lane.b32.xlu0 %v1260_v46, %s1423_s2 }
 0x5e7   :  { %v1263_v31 = vpop.permute.xlu0 %1262 }
 0x5e8   :  { %1266 = vst.msk [vmem:[#allocation2] sm:$0x3] %vm1265_vm6, %v1263_v31 }
 0x5e9   :  { %1409 = shalt.err (!%p1406_p4)
}
 0x5ea   :  { %1276 = dma.vmem_to_hbm [thread:$0]  %s1274_s6, 32, %s2475_s11, [#allocation3]  }
 0x5eb   :  { %1418 = dma.done.wait [#allocation3], 32  }
 0x5ec   :  { %1419 = vsyncadd [#allocation3], 4294967264 }
 0x5ed   :  { %1280 = vsyncpa [#allocation3], 1 }

</bundles_post_ra>
